<compile_context>
chip_gen: v6e
topology: v6e:2x2x1
jax: 0.10.0
libtpu: 0.0.40
codegen_flags: <defaults>
</compile_context>

<pallas_src>
import functools

import jax
import jax.numpy as jnp
from jax import lax
from jax.experimental import pallas as pl
from jax.experimental.pallas import tpu as pltpu

IN_DIM = 784
IN_PAD = 896            # 7 * 128; column IN_DIM doubles as the ones/bias column
HID = 128
OUT_DIM = 10
OUT_PAD = 128
NCAT = 2 * HID          # fused first-matmul output: [h_pre | c_logit | zeros]
T_PARAM = 0.7
EPS = 1e-5
TM_MAX = 512            # rows per grid step for large batches


# ---------------------------------------------------------------------------
# Poincare-ball helpers (pure jnp/lax, traced inside the kernel body).
# Row-norm reductions are computed once by the caller and reused.
# ---------------------------------------------------------------------------
def _artanh(x):
    x = jnp.clip(x, -1.0 + 1e-7, 1.0 - 1e-7)
    return 0.5 * jnp.log((1.0 + x) / (1.0 - x))


def _project_scale(sq, c):
    # scale that clips a point of squared norm `sq` to the open ball:
    #   x * min(1, max_norm / ||x||)    (rsqrt keeps the divide on the EUP)
    sq = jnp.maximum(sq, 1e-15)
    max_norm = (1.0 - EPS) / jnp.sqrt(c)
    return jnp.minimum(1.0, max_norm * lax.rsqrt(sq))


def _mobius_add(x, y, xy, x2, y2, c):
    # Mobius addition with all cross-lane reductions supplied by the caller.
    num = (1.0 + 2.0 * c * xy + c * y2) * x + (1.0 - c * x2) * y
    den = 1.0 + 2.0 * c * xy + (c * c) * x2 * y2
    return num * pl.reciprocal(den + 1e-15, approx=True)


def _poincare_ball_layer(h, u, c, t):
    # TODO(synk): exact semantics of rs.poincare_ball_layer are not public;
    # implemented as the standard geodesic  h (+)_c ( t (x)_c ((-h) (+)_c u) ).
    h_sq = jnp.sum(h * h, axis=-1, keepdims=True)
    u_sq = jnp.sum(u * u, axis=-1, keepdims=True)
    hu = jnp.sum(h * u, axis=-1, keepdims=True)

    sh = _project_scale(h_sq, c)
    su = _project_scale(u_sq, c)
    hp, hp_sq = h * sh, h_sq * sh * sh
    up, up_sq = u * su, u_sq * su * su
    hup = hu * sh * su

    # delta = (-hp) (+)_c up
    delta = _mobius_add(-hp, up, -hup, hp_sq, up_sq, c)

    # step = t (x)_c delta
    d_sq = jnp.sum(delta * delta, axis=-1, keepdims=True)
    dnorm = jnp.sqrt(jnp.maximum(d_sq, 1e-15))
    sqrt_c = jnp.sqrt(c)
    gamma = jnp.tanh(t * _artanh(sqrt_c * dnorm)) * pl.reciprocal(
        sqrt_c * dnorm, approx=True)
    step = gamma * delta
    step_sq = gamma * gamma * d_sq

    # z = hp (+)_c step
    h_step = gamma * jnp.sum(hp * delta, axis=-1, keepdims=True)
    z = _mobius_add(hp, step, h_step, hp_sq, step_sq, c)

    # final projection back to the ball
    z_sq = jnp.sum(z * z, axis=-1, keepdims=True)
    return z * _project_scale(z_sq, c)


# ---------------------------------------------------------------------------
# Pallas kernel
# ---------------------------------------------------------------------------
def _mlp_kernel(x_ref, wcat_ref, w2o_ref, b2o_ref, o_ref, *, batch):
    tm = x_ref.shape[0]
    x = x_ref[...]                                      # (TM, IN_PAD) bf16

    # Fused first matmul: [x@W1 + b1 | x@wc + bc | 0] in a single MXU pass
    # (biases ride on the ones column at x[:, IN_DIM] / weight row IN_DIM).
    hc = jnp.dot(x, wcat_ref[...], preferred_element_type=jnp.float32)
    h_pre = hc[:, :HID]
    c_logits = hc[:, HID:HID + 1]

    # Curvature prediction head; mean over the *valid* rows of this tile.
    # TODO(synk): with more than one batch tile this mean (and the NaN-any
    # fallback below) is per-tile, whereas the reference uses a global mean.
    c_pred = jax.nn.sigmoid(c_logits) * 0.009 + 0.001
    rows = lax.broadcasted_iota(jnp.int32, (tm, 1), 0) + pl.program_id(0) * tm
    valid = (rows < batch).astype(jnp.float32)
    c_avg = jnp.sum(c_pred * valid) / jnp.maximum(jnp.sum(valid), 1.0)
    safe_c = jnp.clip(c_avg, 0.001, 0.01)

    # Hidden layer (bf16 matmul operands, f32 accumulation / activations).
    w2o = w2o_ref[...]                                  # [W2 | Wo_padded] bf16
    h = jnp.tanh(h_pre)
    u = jax.nn.sigmoid(
        jnp.dot(h.astype(jnp.bfloat16), w2o[:, :HID],
                preferred_element_type=jnp.float32) + b2o_ref[:, :HID])

    # Poincare ball layer with dynamically predicted curvature (f32).
    z = _poincare_ball_layer(h, u, safe_c, T_PARAM)

    # NaN fallback (global over the tile, as in the reference).
    has_nan = jnp.any(jnp.isnan(z))
    z = jnp.where(has_nan, h, z)

    # Lane-dense output projection (cols 10..127 of Wo/bias are zero padding).
    out = jnp.dot(z.astype(jnp.bfloat16), w2o[:, HID:],
                  preferred_element_type=jnp.float32) + b2o_ref[:, HID:]
    o_ref[...] = out.astype(o_ref.dtype)


# ---------------------------------------------------------------------------
# Wrapper
# ---------------------------------------------------------------------------
def _round_up(v, m):
    return (v + m - 1) // m * m


def safe_dynamic_curvature_mlp(x, params):
    """x: (B, C, H, W) or (B, in_dim). Returns (B, out_dim) float32."""
    w1, b1, w2, b2, wc, bc, wo, bo = params
    B = x.shape[0]
    x2d = x.reshape(B, -1).astype(jnp.float32)          # x.view(B, -1)
    assert x2d.shape[1] == IN_DIM

    # ---- pack parameters into MXU / lane friendly layouts (cheap; in a real
    # deployment this is done once at parameter-load time) ----
    wcat = jnp.zeros((IN_PAD, NCAT), jnp.float32)
    wcat = wcat.at[:IN_DIM, :HID].set(w1)               # W1
    wcat = wcat.at[:IN_DIM, HID:HID + 1].set(wc)        # curvature head
    wcat = wcat.at[IN_DIM, :HID].set(b1.reshape(-1))    # b1 via ones column
    wcat = wcat.at[IN_DIM, HID].set(bc.reshape(()))     # bc via ones column
    wcat = wcat.astype(jnp.bfloat16)

    # [W2 | Wo_padded]: one resident (HID, 2*HID) bf16 matrix.
    w2o = jnp.zeros((HID, HID + OUT_PAD), jnp.float32)
    w2o = w2o.at[:, :HID].set(w2)
    w2o = w2o.at[:, HID:HID + OUT_DIM].set(wo)
    w2o = w2o.astype(jnp.bfloat16)

    b2o = jnp.zeros((1, HID + OUT_PAD), jnp.float32)    # [b2 | bo_padded]
    b2o = b2o.at[0, :HID].set(b2.reshape(-1))
    b2o = b2o.at[0, HID:HID + OUT_DIM].set(bo.reshape(-1))

    # ---- pad batch (>= one sublane, multiple of the row tile) and features
    # (784 -> 896; the ones column at col 784 carries the fused biases) ----
    tm = min(_round_up(B, 8), TM_MAX)
    b_pad = _round_up(B, tm)
    xp = jnp.zeros((b_pad, IN_PAD), jnp.float32)
    xp = xp.at[:B, :IN_DIM].set(x2d)
    xp = xp.at[:B, IN_DIM].set(1.0)
    xp = xp.astype(jnp.bfloat16)

    grid_m = b_pad // tm
    kernel = functools.partial(_mlp_kernel, batch=B)

    out_pad = pl.pallas_call(
        kernel,
        out_shape=jax.ShapeDtypeStruct((b_pad, OUT_PAD), jnp.float32),
        grid=(grid_m,),
        in_specs=[
            pl.BlockSpec((tm, IN_PAD), lambda i: (i, 0)),            # x tile
            pl.BlockSpec((IN_PAD, NCAT), lambda i: (0, 0)),          # W1|wc (+b1,bc)
            pl.BlockSpec((HID, HID + OUT_PAD), lambda i: (0, 0)),    # W2|Wo
            pl.BlockSpec((1, HID + OUT_PAD), lambda i: (0, 0)),      # b2|bo
        ],
        out_specs=pl.BlockSpec((tm, OUT_PAD), lambda i: (i, 0)),
        compiler_params=pltpu.CompilerParams(
            dimension_semantics=("parallel",),
            vmem_limit_bytes=16 << 20),
    )(xp, wcat, w2o, b2o)

    return out_pad[:B, :OUT_DIM]


def init_params(key):
    ks = jax.random.split(key, 4)
    w1 = jax.random.normal(ks[0], (IN_DIM, HID), jnp.float32) * 0.01
    b1 = jnp.zeros((1, HID), jnp.float32)
    w2 = jax.random.normal(ks[1], (HID, HID), jnp.float32) * 0.01
    b2 = jnp.zeros((1, HID), jnp.float32)
    # curvature_fc = nn.Linear(in_dim, 1); stored pre-transposed as (in_dim, 1)
    bound = 1.0 / (IN_DIM ** 0.5)
    wc = jax.random.uniform(ks[2], (IN_DIM, 1), jnp.float32, -bound, bound)
    bc = jnp.zeros((1, 1), jnp.float32)
    wo = jax.random.normal(ks[3], (HID, OUT_DIM), jnp.float32) * 0.01
    bo = jnp.zeros((1, OUT_DIM), jnp.float32)
    return (w1, b1, w2, b2, wc, bc, wo, bo)


if __name__ == "__main__":
    key = jax.random.PRNGKey(0)
    k_x, k_p = jax.random.split(key)
    # batch=2, single-channel 28x28 images -> flattened to in_dim=784
    x = jax.random.normal(k_x, (2, 1, 28, 28), jnp.float32)
    params = init_params(k_p)

    out = safe_dynamic_curvature_mlp(x, params)
    out = jax.block_until_ready(out)
    assert out.shape == (2, OUT_DIM) and out.dtype == jnp.float32
    assert not bool(jnp.any(jnp.isnan(out)))
    print("KERNEL_OK")
</pallas_src>

<mosaic_0001>
module attributes {stable_mosaic.version = 11 : i64} {
  func.func @_mlp_kernel(%arg0: i32, %arg1: memref<8x896xbf16, #tpu.memory_space<vmem>>, %arg2: memref<896x256xbf16, #tpu.memory_space<vmem>>, %arg3: memref<128x256xbf16, #tpu.memory_space<vmem>>, %arg4: memref<1x256xf32, #tpu.memory_space<vmem>>, %arg5: memref<8x128xf32, #tpu.memory_space<vmem>>) attributes {dimension_semantics = [#tpu.dimension_semantics<parallel>], iteration_bounds = array<i64: 1>, scalar_prefetch = 0 : i64, scratch_operands = 0 : i64, tpu.core_type = #tpu.core_type<tc>, window_params = [{transform_indices = @transform_0, window_bounds = array<i64: 8, 896>}, {pipeline_mode = #tpu.pipeline_mode<synchronous>, transform_indices = @transform_1, window_bounds = array<i64: 896, 256>}, {pipeline_mode = #tpu.pipeline_mode<synchronous>, transform_indices = @transform_2, window_bounds = array<i64: 128, 256>}, {pipeline_mode = #tpu.pipeline_mode<synchronous>, transform_indices = @transform_3, window_bounds = array<i64: 1, 256>}, {transform_indices = @transform_4, window_bounds = array<i64: 8, 128>}]} {
    %c0 = arith.constant 0 : index
    %c0_0 = arith.constant 0 : index
    %0 = vector.load %arg1[%c0, %c0_0] : memref<8x896xbf16, #tpu.memory_space<vmem>>, vector<8x896xbf16>
    %c0_1 = arith.constant 0 : index
    %c0_2 = arith.constant 0 : index
    %1 = vector.load %arg2[%c0_1, %c0_2] : memref<896x256xbf16, #tpu.memory_space<vmem>>, vector<896x256xbf16>
    %cst = arith.constant dense<0.000000e+00> : vector<8x256xf32>
    %2 = tpu.matmul %0, %1, %cst {dimension_numbers = #tpu.dot_dimension_numbers<[1], [0], [0], [1], [0, 0, 1, 1], [], []>} : vector<8x896xbf16>, vector<896x256xbf16>, vector<8x256xf32> -> vector<8x256xf32>
    %3 = vector.extract_strided_slice %2 {offsets = [0, 0], sizes = [8, 128], strides = [1, 1]} : vector<8x256xf32> to vector<8x128xf32>
    %4 = vector.extract_strided_slice %2 {offsets = [0, 128], sizes = [8, 1], strides = [1, 1]} : vector<8x256xf32> to vector<8x1xf32>
    %5 = arith.negf %4 : vector<8x1xf32>
    %6 = math.exp %5 : vector<8x1xf32>
    %cst_3 = arith.constant 1.000000e+00 : f32
    %7 = vector.broadcast %cst_3 : f32 to vector<8x1xf32>
    %8 = arith.addf %7, %6 : vector<8x1xf32>
    %9 = arith.divf %7, %8 : vector<8x1xf32>
    %cst_4 = arith.constant 0.00899999961 : f32
    %10 = vector.broadcast %cst_4 : f32 to vector<8x1xf32>
    %11 = arith.mulf %9, %10 : vector<8x1xf32>
    %cst_5 = arith.constant 1.000000e-03 : f32
    %12 = vector.broadcast %cst_5 : f32 to vector<8x1xf32>
    %13 = arith.addf %11, %12 : vector<8x1xf32>
    %14 = tpu.iota {dimensions = array<i32: 0>} : vector<8x1xi32>
    %c8_i32 = arith.constant 8 : i32
    %15 = arith.muli %arg0, %c8_i32 : i32
    %16 = vector.broadcast %15 : i32 to vector<8x1xi32>
    %17 = arith.addi %14, %16 : vector<8x1xi32>
    %c2_i32 = arith.constant 2 : i32
    %18 = vector.broadcast %c2_i32 : i32 to vector<8x1xi32>
    %19 = arith.cmpi slt, %17, %18 : vector<8x1xi32>
    %20 = arith.extui %19 : vector<8x1xi1> to vector<8x1xi32>
    %21 = arith.sitofp %20 : vector<8x1xi32> to vector<8x1xf32>
    %22 = arith.mulf %13, %21 : vector<8x1xf32>
    %23 = vector.shape_cast %22 : vector<8x1xf32> to vector<1x8x1xf32>
    %cst_6 = arith.constant dense<0.000000e+00> : vector<1xf32>
    %24 = vector.multi_reduction <add>, %23, %cst_6 [1, 2] : vector<1x8x1xf32> to vector<1xf32>
    %25 = vector.shape_cast %24 : vector<1xf32> to vector<1x1x1xf32>
    %26 = vector.extract %25[0, 0, 0] : f32 from vector<1x1x1xf32>
    %27 = vector.shape_cast %21 : vector<8x1xf32> to vector<1x8x1xf32>
    %cst_7 = arith.constant dense<0.000000e+00> : vector<1xf32>
    %28 = vector.multi_reduction <add>, %27, %cst_7 [1, 2] : vector<1x8x1xf32> to vector<1xf32>
    %29 = vector.shape_cast %28 : vector<1xf32> to vector<1x1x1xf32>
    %30 = vector.extract %29[0, 0, 0] : f32 from vector<1x1x1xf32>
    %cst_8 = arith.constant 1.000000e+00 : f32
    %31 = arith.maximumf %30, %cst_8 : f32
    %32 = arith.divf %26, %31 : f32
    %cst_9 = arith.constant 1.000000e-03 : f32
    %cst_10 = arith.constant 0.00999999977 : f32
    %33 = arith.maximumf %cst_9, %32 : f32
    %34 = arith.minimumf %cst_10, %33 : f32
    %c0_11 = arith.constant 0 : index
    %c0_12 = arith.constant 0 : index
    %35 = vector.load %arg3[%c0_11, %c0_12] : memref<128x256xbf16, #tpu.memory_space<vmem>>, vector<128x256xbf16>
    %36 = math.tanh %3 : vector<8x128xf32>
    %37 = arith.truncf %36 : vector<8x128xf32> to vector<8x128xbf16>
    %38 = vector.extract_strided_slice %35 {offsets = [0, 0], sizes = [128, 128], strides = [1, 1]} : vector<128x256xbf16> to vector<128x128xbf16>
    %cst_13 = arith.constant dense<0.000000e+00> : vector<8x128xf32>
    %39 = tpu.matmul %37, %38, %cst_13 {dimension_numbers = #tpu.dot_dimension_numbers<[1], [0], [0], [1], [0, 0, 1, 1], [], []>} : vector<8x128xbf16>, vector<128x128xbf16>, vector<8x128xf32> -> vector<8x128xf32>
    %c0_14 = arith.constant 0 : index
    %c0_15 = arith.constant 0 : index
    %40 = vector.load %arg4[%c0_14, %c0_15] : memref<1x256xf32, #tpu.memory_space<vmem>>, vector<1x128xf32>
    %41 = vector.broadcast %40 : vector<1x128xf32> to vector<8x128xf32>
    %42 = arith.addf %39, %41 : vector<8x128xf32>
    %43 = arith.negf %42 : vector<8x128xf32>
    %44 = math.exp %43 : vector<8x128xf32>
    %cst_16 = arith.constant 1.000000e+00 : f32
    %45 = vector.broadcast %cst_16 : f32 to vector<8x128xf32>
    %46 = arith.addf %45, %44 : vector<8x128xf32>
    %47 = arith.divf %45, %46 : vector<8x128xf32>
    %48 = arith.mulf %36, %36 : vector<8x128xf32>
    %cst_17 = arith.constant dense<0.000000e+00> : vector<8xf32>
    %49 = vector.multi_reduction <add>, %48, %cst_17 [1] : vector<8x128xf32> to vector<8xf32>
    %50 = vector.shape_cast %49 : vector<8xf32> to vector<8x1xf32>
    %51 = arith.mulf %47, %47 : vector<8x128xf32>
    %cst_18 = arith.constant dense<0.000000e+00> : vector<8xf32>
    %52 = vector.multi_reduction <add>, %51, %cst_18 [1] : vector<8x128xf32> to vector<8xf32>
    %53 = vector.shape_cast %52 : vector<8xf32> to vector<8x1xf32>
    %54 = arith.mulf %36, %47 : vector<8x128xf32>
    %cst_19 = arith.constant dense<0.000000e+00> : vector<8xf32>
    %55 = vector.multi_reduction <add>, %54, %cst_19 [1] : vector<8x128xf32> to vector<8xf32>
    %56 = vector.shape_cast %55 : vector<8xf32> to vector<8x1xf32>
    %cst_20 = arith.constant 1.000000e-15 : f32
    %57 = vector.broadcast %cst_20 : f32 to vector<8x1xf32>
    %58 = arith.maximumf %50, %57 : vector<8x1xf32>
    %59 = math.sqrt %34 : f32
    %cst_21 = arith.constant 0.999989986 : f32
    %60 = arith.divf %cst_21, %59 : f32
    %61 = math.rsqrt %58 : vector<8x1xf32>
    %62 = vector.broadcast %60 : f32 to vector<8x1xf32>
    %63 = arith.mulf %62, %61 : vector<8x1xf32>
    %cst_22 = arith.constant 1.000000e+00 : f32
    %64 = vector.broadcast %cst_22 : f32 to vector<8x1xf32>
    %65 = arith.minimumf %64, %63 : vector<8x1xf32>
    %cst_23 = arith.constant 1.000000e-15 : f32
    %66 = vector.broadcast %cst_23 : f32 to vector<8x1xf32>
    %67 = arith.maximumf %53, %66 : vector<8x1xf32>
    %68 = math.sqrt %34 : f32
    %cst_24 = arith.constant 0.999989986 : f32
    %69 = arith.divf %cst_24, %68 : f32
    %70 = math.rsqrt %67 : vector<8x1xf32>
    %71 = vector.broadcast %69 : f32 to vector<8x1xf32>
    %72 = arith.mulf %71, %70 : vector<8x1xf32>
    %cst_25 = arith.constant 1.000000e+00 : f32
    %73 = vector.broadcast %cst_25 : f32 to vector<8x1xf32>
    %74 = arith.minimumf %73, %72 : vector<8x1xf32>
    %75 = vector.broadcast %65 : vector<8x1xf32> to vector<8x128xf32>
    %76 = arith.mulf %36, %75 : vector<8x128xf32>
    %77 = arith.mulf %50, %65 : vector<8x1xf32>
    %78 = arith.mulf %77, %65 : vector<8x1xf32>
    %79 = vector.broadcast %74 : vector<8x1xf32> to vector<8x128xf32>
    %80 = arith.mulf %47, %79 : vector<8x128xf32>
    %81 = arith.mulf %53, %74 : vector<8x1xf32>
    %82 = arith.mulf %81, %74 : vector<8x1xf32>
    %83 = arith.mulf %56, %65 : vector<8x1xf32>
    %84 = arith.mulf %83, %74 : vector<8x1xf32>
    %cst_26 = arith.constant 0.000000e+00 : f32
    %85 = vector.broadcast %cst_26 : f32 to vector<8x128xf32>
    %86 = arith.subf %85, %76 : vector<8x128xf32>
    %cst_27 = arith.constant 0.000000e+00 : f32
    %87 = vector.broadcast %cst_27 : f32 to vector<8x1xf32>
    %88 = arith.subf %87, %84 : vector<8x1xf32>
    %cst_28 = arith.constant 2.000000e+00 : f32
    %89 = arith.mulf %cst_28, %34 : f32
    %90 = vector.broadcast %89 : f32 to vector<8x1xf32>
    %91 = arith.mulf %90, %88 : vector<8x1xf32>
    %cst_29 = arith.constant 1.000000e+00 : f32
    %92 = vector.broadcast %cst_29 : f32 to vector<8x1xf32>
    %93 = arith.addf %92, %91 : vector<8x1xf32>
    %94 = vector.broadcast %34 : f32 to vector<8x1xf32>
    %95 = arith.mulf %94, %82 : vector<8x1xf32>
    %96 = arith.addf %93, %95 : vector<8x1xf32>
    %97 = vector.broadcast %96 : vector<8x1xf32> to vector<8x128xf32>
    %98 = arith.mulf %97, %86 : vector<8x128xf32>
    %99 = vector.broadcast %34 : f32 to vector<8x1xf32>
    %100 = arith.mulf %99, %78 : vector<8x1xf32>
    %cst_30 = arith.constant 1.000000e+00 : f32
    %101 = vector.broadcast %cst_30 : f32 to vector<8x1xf32>
    %102 = arith.subf %101, %100 : vector<8x1xf32>
    %103 = vector.broadcast %102 : vector<8x1xf32> to vector<8x128xf32>
    %104 = arith.mulf %103, %80 : vector<8x128xf32>
    %105 = arith.addf %98, %104 : vector<8x128xf32>
    %cst_31 = arith.constant 2.000000e+00 : f32
    %106 = arith.mulf %cst_31, %34 : f32
    %107 = vector.broadcast %106 : f32 to vector<8x1xf32>
    %108 = arith.mulf %107, %88 : vector<8x1xf32>
    %cst_32 = arith.constant 1.000000e+00 : f32
    %109 = vector.broadcast %cst_32 : f32 to vector<8x1xf32>
    %110 = arith.addf %109, %108 : vector<8x1xf32>
    %111 = arith.mulf %34, %34 : f32
    %112 = vector.broadcast %111 : f32 to vector<8x1xf32>
    %113 = arith.mulf %112, %78 : vector<8x1xf32>
    %114 = arith.mulf %113, %82 : vector<8x1xf32>
    %115 = arith.addf %110, %114 : vector<8x1xf32>
    %cst_33 = arith.constant 1.000000e-15 : f32
    %116 = vector.broadcast %cst_33 : f32 to vector<8x1xf32>
    %117 = arith.addf %115, %116 : vector<8x1xf32>
    %118 = tpu.reciprocal %117 {approx = true} : vector<8x1xf32> -> vector<8x1xf32>
    %119 = vector.broadcast %118 : vector<8x1xf32> to vector<8x128xf32>
    %120 = arith.mulf %105, %119 : vector<8x128xf32>
    %121 = arith.mulf %120, %120 : vector<8x128xf32>
    %cst_34 = arith.constant dense<0.000000e+00> : vector<8xf32>
    %122 = vector.multi_reduction <add>, %121, %cst_34 [1] : vector<8x128xf32> to vector<8xf32>
    %123 = vector.shape_cast %122 : vector<8xf32> to vector<8x1xf32>
    %cst_35 = arith.constant 1.000000e-15 : f32
    %124 = vector.broadcast %cst_35 : f32 to vector<8x1xf32>
    %125 = arith.maximumf %123, %124 : vector<8x1xf32>
    %126 = math.sqrt %125 : vector<8x1xf32>
    %127 = math.sqrt %34 : f32
    %128 = vector.broadcast %127 : f32 to vector<8x1xf32>
    %129 = arith.mulf %128, %126 : vector<8x1xf32>
    %cst_36 = arith.constant -0.99999988 : f32
    %cst_37 = arith.constant 0.99999988 : f32
    %130 = vector.broadcast %cst_36 : f32 to vector<8x1xf32>
    %131 = arith.maximumf %130, %129 : vector<8x1xf32>
    %132 = vector.broadcast %cst_37 : f32 to vector<8x1xf32>
    %133 = arith.minimumf %132, %131 : vector<8x1xf32>
    %cst_38 = arith.constant 1.000000e+00 : f32
    %134 = vector.broadcast %cst_38 : f32 to vector<8x1xf32>
    %135 = arith.addf %134, %133 : vector<8x1xf32>
    %cst_39 = arith.constant 1.000000e+00 : f32
    %136 = vector.broadcast %cst_39 : f32 to vector<8x1xf32>
    %137 = arith.subf %136, %133 : vector<8x1xf32>
    %138 = arith.divf %135, %137 : vector<8x1xf32>
    %139 = math.log %138 : vector<8x1xf32>
    %cst_40 = arith.constant 5.000000e-01 : f32
    %140 = vector.broadcast %cst_40 : f32 to vector<8x1xf32>
    %141 = arith.mulf %140, %139 : vector<8x1xf32>
    %cst_41 = arith.constant 0.699999988 : f32
    %142 = vector.broadcast %cst_41 : f32 to vector<8x1xf32>
    %143 = arith.mulf %142, %141 : vector<8x1xf32>
    %144 = math.tanh %143 : vector<8x1xf32>
    %145 = vector.broadcast %127 : f32 to vector<8x1xf32>
    %146 = arith.mulf %145, %126 : vector<8x1xf32>
    %147 = tpu.reciprocal %146 {approx = true} : vector<8x1xf32> -> vector<8x1xf32>
    %148 = arith.mulf %144, %147 : vector<8x1xf32>
    %149 = vector.broadcast %148 : vector<8x1xf32> to vector<8x128xf32>
    %150 = arith.mulf %149, %120 : vector<8x128xf32>
    %151 = arith.mulf %148, %148 : vector<8x1xf32>
    %152 = arith.mulf %151, %123 : vector<8x1xf32>
    %153 = arith.mulf %76, %120 : vector<8x128xf32>
    %cst_42 = arith.constant dense<0.000000e+00> : vector<8xf32>
    %154 = vector.multi_reduction <add>, %153, %cst_42 [1] : vector<8x128xf32> to vector<8xf32>
    %155 = vector.shape_cast %154 : vector<8xf32> to vector<8x1xf32>
    %156 = arith.mulf %148, %155 : vector<8x1xf32>
    %cst_43 = arith.constant 2.000000e+00 : f32
    %157 = arith.mulf %cst_43, %34 : f32
    %158 = vector.broadcast %157 : f32 to vector<8x1xf32>
    %159 = arith.mulf %158, %156 : vector<8x1xf32>
    %cst_44 = arith.constant 1.000000e+00 : f32
    %160 = vector.broadcast %cst_44 : f32 to vector<8x1xf32>
    %161 = arith.addf %160, %159 : vector<8x1xf32>
    %162 = vector.broadcast %34 : f32 to vector<8x1xf32>
    %163 = arith.mulf %162, %152 : vector<8x1xf32>
    %164 = arith.addf %161, %163 : vector<8x1xf32>
    %165 = vector.broadcast %164 : vector<8x1xf32> to vector<8x128xf32>
    %166 = arith.mulf %165, %76 : vector<8x128xf32>
    %167 = vector.broadcast %34 : f32 to vector<8x1xf32>
    %168 = arith.mulf %167, %78 : vector<8x1xf32>
    %cst_45 = arith.constant 1.000000e+00 : f32
    %169 = vector.broadcast %cst_45 : f32 to vector<8x1xf32>
    %170 = arith.subf %169, %168 : vector<8x1xf32>
    %171 = vector.broadcast %170 : vector<8x1xf32> to vector<8x128xf32>
    %172 = arith.mulf %171, %150 : vector<8x128xf32>
    %173 = arith.addf %166, %172 : vector<8x128xf32>
    %cst_46 = arith.constant 2.000000e+00 : f32
    %174 = arith.mulf %cst_46, %34 : f32
    %175 = vector.broadcast %174 : f32 to vector<8x1xf32>
    %176 = arith.mulf %175, %156 : vector<8x1xf32>
    %cst_47 = arith.constant 1.000000e+00 : f32
    %177 = vector.broadcast %cst_47 : f32 to vector<8x1xf32>
    %178 = arith.addf %177, %176 : vector<8x1xf32>
    %179 = arith.mulf %34, %34 : f32
    %180 = vector.broadcast %179 : f32 to vector<8x1xf32>
    %181 = arith.mulf %180, %78 : vector<8x1xf32>
    %182 = arith.mulf %181, %152 : vector<8x1xf32>
    %183 = arith.addf %178, %182 : vector<8x1xf32>
    %cst_48 = arith.constant 1.000000e-15 : f32
    %184 = vector.broadcast %cst_48 : f32 to vector<8x1xf32>
    %185 = arith.addf %183, %184 : vector<8x1xf32>
    %186 = tpu.reciprocal %185 {approx = true} : vector<8x1xf32> -> vector<8x1xf32>
    %187 = vector.broadcast %186 : vector<8x1xf32> to vector<8x128xf32>
    %188 = arith.mulf %173, %187 : vector<8x128xf32>
    %189 = arith.mulf %188, %188 : vector<8x128xf32>
    %cst_49 = arith.constant dense<0.000000e+00> : vector<8xf32>
    %190 = vector.multi_reduction <add>, %189, %cst_49 [1] : vector<8x128xf32> to vector<8xf32>
    %191 = vector.shape_cast %190 : vector<8xf32> to vector<8x1xf32>
    %cst_50 = arith.constant 1.000000e-15 : f32
    %192 = vector.broadcast %cst_50 : f32 to vector<8x1xf32>
    %193 = arith.maximumf %191, %192 : vector<8x1xf32>
    %194 = math.sqrt %34 : f32
    %cst_51 = arith.constant 0.999989986 : f32
    %195 = arith.divf %cst_51, %194 : f32
    %196 = math.rsqrt %193 : vector<8x1xf32>
    %197 = vector.broadcast %195 : f32 to vector<8x1xf32>
    %198 = arith.mulf %197, %196 : vector<8x1xf32>
    %cst_52 = arith.constant 1.000000e+00 : f32
    %199 = vector.broadcast %cst_52 : f32 to vector<8x1xf32>
    %200 = arith.minimumf %199, %198 : vector<8x1xf32>
    %201 = vector.broadcast %200 : vector<8x1xf32> to vector<8x128xf32>
    %202 = arith.mulf %188, %201 : vector<8x128xf32>
    %203 = arith.cmpf one, %202, %202 : vector<8x128xf32>
    %cst_53 = arith.constant 1.000000e+00 : f32
    %cst_54 = arith.constant 0.000000e+00 : f32
    %204 = vector.broadcast %cst_53 : f32 to vector<8x128xf32>
    %205 = vector.broadcast %cst_54 : f32 to vector<8x128xf32>
    %206 = arith.select %203, %204, %205 : vector<8x128xi1>, vector<8x128xf32>
    %207 = vector.shape_cast %206 : vector<8x128xf32> to vector<1x8x128xf32>
    %cst_55 = arith.constant dense<0xFF800000> : vector<1xf32>
    %208 = vector.multi_reduction <maximumf>, %207, %cst_55 [1, 2] : vector<1x8x128xf32> to vector<1xf32>
    %209 = vector.shape_cast %208 : vector<1xf32> to vector<1x1x1xf32>
    %210 = vector.extract %209[0, 0, 0] : f32 from vector<1x1x1xf32>
    %cst_56 = arith.constant 0.000000e+00 : f32
    %211 = arith.cmpf ogt, %210, %cst_56 : f32
    %212 = arith.select %211, %36, %202 : vector<8x128xf32>
    %213 = arith.truncf %212 : vector<8x128xf32> to vector<8x128xbf16>
    %214 = vector.extract_strided_slice %35 {offsets = [0, 128], sizes = [128, 128], strides = [1, 1]} : vector<128x256xbf16> to vector<128x128xbf16>
    %cst_57 = arith.constant dense<0.000000e+00> : vector<8x128xf32>
    %215 = tpu.matmul %213, %214, %cst_57 {dimension_numbers = #tpu.dot_dimension_numbers<[1], [0], [0], [1], [0, 0, 1, 1], [], []>} : vector<8x128xbf16>, vector<128x128xbf16>, vector<8x128xf32> -> vector<8x128xf32>
    %c0_58 = arith.constant 0 : index
    %c128 = arith.constant 128 : index
    %216 = vector.load %arg4[%c0_58, %c128] : memref<1x256xf32, #tpu.memory_space<vmem>>, vector<1x128xf32>
    %217 = vector.broadcast %216 : vector<1x128xf32> to vector<8x128xf32>
    %218 = arith.addf %215, %217 : vector<8x128xf32>
    %c0_59 = arith.constant 0 : index
    %c0_60 = arith.constant 0 : index
    %219 = vector.load %arg5[%c0_59, %c0_60] : memref<8x128xf32, #tpu.memory_space<vmem>>, vector<8x128xf32>
    tpu.vector_store %arg5[%c0_59, %c0_60], %218 {strides = array<i32>} : memref<8x128xf32, #tpu.memory_space<vmem>>, vector<8x128xf32>,
    return
  }
  func.func @transform_0(%arg0: i32) -> (i32, i32) {
    %c0_i32 = arith.constant 0 : i32
    %c0_i32_0 = arith.constant 0 : i32
    return %arg0, %c0_i32 : i32, i32
  }
  func.func @transform_1(%arg0: i32) -> (i32, i32) {
    %c0_i32 = arith.constant 0 : i32
    %c0_i32_0 = arith.constant 0 : i32
    %c0_i32_1 = arith.constant 0 : i32
    return %c0_i32, %c0_i32_0 : i32, i32
  }
  func.func @transform_2(%arg0: i32) -> (i32, i32) {
    %c0_i32 = arith.constant 0 : i32
    %c0_i32_0 = arith.constant 0 : i32
    %c0_i32_1 = arith.constant 0 : i32
    return %c0_i32, %c0_i32_0 : i32, i32
  }
  func.func @transform_3(%arg0: i32) -> (i32, i32) {
    %c0_i32 = arith.constant 0 : i32
    %c0_i32_0 = arith.constant 0 : i32
    %c0_i32_1 = arith.constant 0 : i32
    return %c0_i32, %c0_i32_0 : i32, i32
  }
  func.func @transform_4(%arg0: i32) -> (i32, i32) {
    %c0_i32 = arith.constant 0 : i32
    %c0_i32_0 = arith.constant 0 : i32
    return %arg0, %c0_i32 : i32, i32
  }
}

</mosaic_0001>

<bundles_post_ra>
// kernel: tpu_custom_call.1
= control target key start
LH: loop header
LB: loop body
LE: loop exit
PB: predicated region body
PF: predicated region fallthrough
CT: control target
= control target key end

     0   :  { %9 = vsyncpa [#allocation3], 0  ;;  %s1983_s0 = inlined_call_operand.hbm [shape: bf16[8,896], index: 0, kind: input, shape index: {}]   ;;  %s1984_s1 = inlined_call_operand.hbm [shape: bf16[896,256], index: 1, kind: input, shape index: {}]   ;;  %s1985_s2 = inlined_call_operand.hbm [shape: bf16[128,256], index: 2, kind: input, shape index: {}]   ;;  %s1986_s3 = inlined_call_operand.vmem [shape: f32[1,256], index: 3, kind: input, shape index: {}]   ;;  %s1987_s4 = inlined_call_operand.hbm [shape: f32[8,128], index: 4, kind: output, shape index: {}]  }
   0x1   :  { %10 = vsyncpa [#allocation6], 0 }
   0x2   :  { %11 = vsyncpa [#allocation4], 0  ;;  %s1858_s15 = smov [#allocation5]  }
   0x3   :  { %s27_s16 = sshll.u32 %s1858_s15, 4  ;;  %s28_s16 = int_to_ptr.vmem [resolvable:$true] %s27_s16 }
   0x4   :  { %s1780_s17 = scalar_lea.vmem %s28_s16, 14336  ;;  %p1785_p1 = scmp.lt.s32.totalorder %s28_s16, %s28_s16 }
   0x5   :  { %p1781_p0 = scmp.ne.s32.totalorder %s28_s16, %s1780_s17  ;;  %p1786_p2 = scmp.lt.s32.totalorder %s1780_s17, %s1780_s17 }
   0x7   :  { %p1787_p3 = por %p1786_p2, %p1785_p1 }
   0x9   :  { %p1788_p4 = pnand %p1787_p3, %p1781_p0 }
   0xb   :  { %1791 = shalt.err (!%p1788_p4)
}
   0xc   :  { %s1859_s18 = smov 128   ;;  %s1860_s19 = smov 8  }
   0xd   :  { %33 = dma.hbm_to_vmem [thread:$0]  %s1984_s1, 14336, %s28_s16, [#allocation6], %s1859_s18, %s1859_s18, %s1860_s19  }
   0xe   :  { %s1861_s22 = smov [#allocation2]   ;;  %s1862_s24 = smov [#allocation7]  }
   0xf   :  { %s18_s23 = sshll.u32 %s1861_s22, 4  ;;  %s39_s25 = sshll.u32 %s1862_s24, 4  ;;  %s19_s23 = int_to_ptr.vmem [resolvable:$true] %s18_s23  ;;  %s40_s25 = int_to_ptr.vmem [resolvable:$true] %s39_s25 }
  0x10   :  { %s1800_s26 = scalar_lea.vmem %s19_s23, 448  ;;  %p1805_p6 = scmp.lt.s32.totalorder %s19_s23, %s19_s23 }
  0x11   :  { %p1801_p5 = scmp.ne.s32.totalorder %s19_s23, %s1800_s26  ;;  %p1806_p7 = scmp.lt.s32.totalorder %s1800_s26, %s1800_s26 }
  0x13   :  { %p1807_p8 = por %p1806_p7, %p1805_p6 }
  0x15   :  { %p1808_p9 = pnand %p1807_p8, %p1801_p5 }
  0x17   :  { %1811 = shalt.err (!%p1808_p9)
}
  0x18   :  { %21 = dma.hbm_to_vmem [thread:$0]  %s1983_s0, 448, %s19_s23, [#allocation3]  }
  0x19   :  { %s1820_s29 = scalar_lea.vmem %s40_s25, 2048  ;;  %p1825_p11 = scmp.lt.s32.totalorder %s40_s25, %s40_s25 }
  0x1a   :  { %p1821_p10 = scmp.ne.s32.totalorder %s40_s25, %s1820_s29  ;;  %p1826_p12 = scmp.lt.s32.totalorder %s1820_s29, %s1820_s29 }
  0x1c   :  { %p1827_p13 = por %p1826_p12, %p1825_p11 }
  0x1e   :  { %p1828_p0 = pnand %p1827_p13, %p1821_p10 }
  0x20   :  { %1831 = shalt.err (!%p1828_p0)
}
  0x21   :  { %45 = dma.hbm_to_vmem [thread:$0]  %s1985_s2, 2048, %s40_s25, [#allocation6], %s1859_s18, %s1859_s18, %s1860_s19  }
  0x22   :  { %1852 = dma.done.wait [#allocation3], 448  }
  0x23   :  { %1853 = vsyncadd [#allocation3], 4294966848 }
  0x24   :  { %1854 = dma.done.wait [#allocation6], 16384  }
  0x25   :  { %1855 = vsyncadd [#allocation6], 4294950912  ;;  %v1537_v0 = vld [vmem:[#allocation5 + $0x74] ss:$8 sps:$4 sm:$0xff]   ;;  %v1541_v2 = vld [vmem:[#allocation5 + $0x70] ss:$8 sps:$4 sm:$0xff]  }
  0x26   :  { %v1539_v1 = vld [vmem:[#allocation5 + $0x174] ss:$8 sps:$4 sm:$0xff]   ;;  %759 = vmatprep.subr.bf16.mxu0 %v1537_v0  ;;  %v1542_v3 = vld [vmem:[#allocation5 + $0x170] ss:$8 sps:$4 sm:$0xff]   ;;  %v1543_v4 = vld [vmem:[#allocation5 + $0x64] ss:$8 sps:$4 sm:$0xff]  }
  0x27   :  { %800 = vmatprep.subr.bf16.mxu1 %v1539_v1  ;;  %760 = vmatpush1.bf16.msra.mxu0 %v1541_v2  ;;  %v1545_v5 = vld [vmem:[#allocation5 + $0x164] ss:$8 sps:$4 sm:$0xff]   ;;  %v1547_v6 = vld [vmem:[#allocation5 + $0x60] ss:$8 sps:$4 sm:$0xff]   ;;  %v1549_v8 = vld [vmem:[#allocation5 + $0x54] ss:$8 sps:$4 sm:$0xff]  }
  0x28   :  { %801 = vmatpush1.bf16.msra.mxu1 %v1542_v3  ;;  %761 = vmatprep.subr.bf16.mxu0 %v1543_v4  ;;  %v1548_v7 = vld [vmem:[#allocation5 + $0x160] ss:$8 sps:$4 sm:$0xff]   ;;  %v1551_v9 = vld [vmem:[#allocation5 + $0x154] ss:$8 sps:$4 sm:$0xff]   ;;  %v1553_v10 = vld [vmem:[#allocation5 + $0x50] ss:$8 sps:$4 sm:$0xff]  }
  0x29   :  { %802 = vmatprep.subr.bf16.mxu1 %v1545_v5  ;;  %v1554_v11 = vld [vmem:[#allocation5 + $0x150] ss:$8 sps:$4 sm:$0xff]   ;;  %v1555_v12 = vld [vmem:[#allocation5 + $0x44] ss:$8 sps:$4 sm:$0xff]   ;;  %v1559_v14 = vld [vmem:[#allocation5 + $0x40] ss:$8 sps:$4 sm:$0xff]  }
  0x2a   :  { %v1557_v13 = vld [vmem:[#allocation5 + $0x144] ss:$8 sps:$4 sm:$0xff]   ;;  %v1560_v15 = vld [vmem:[#allocation5 + $0x140] ss:$8 sps:$4 sm:$0xff]   ;;  %v1561_v16 = vld [vmem:[#allocation5 + $0x34] ss:$8 sps:$4 sm:$0xff]  }
  0x2b   :  { %762 = vmatpush1.bf16.msra.mxu0 %v1547_v6  ;;  %v1563_v17 = vld [vmem:[#allocation5 + $0x134] ss:$8 sps:$4 sm:$0xff]   ;;  %v1565_v18 = vld [vmem:[#allocation5 + $0x30] ss:$8 sps:$4 sm:$0xff]   ;;  %v1567_v20 = vld [vmem:[#allocation5 + $0x24] ss:$8 sps:$4 sm:$0xff]  }
  0x2c   :  { %803 = vmatpush1.bf16.msra.mxu1 %v1548_v7  ;;  %763 = vmatprep.subr.bf16.mxu0 %v1549_v8  ;;  %v1566_v19 = vld [vmem:[#allocation5 + $0x130] ss:$8 sps:$4 sm:$0xff]   ;;  %v1569_v21 = vld [vmem:[#allocation5 + $0x124] ss:$8 sps:$4 sm:$0xff]   ;;  %v1571_v22 = vld [vmem:[#allocation5 + $0x20] ss:$8 sps:$4 sm:$0xff]  }
  0x2d   :  { %804 = vmatprep.subr.bf16.mxu1 %v1551_v9  ;;  %v1572_v23 = vld [vmem:[#allocation5 + $0x120] ss:$8 sps:$4 sm:$0xff]   ;;  %v1573_v24 = vld [vmem:[#allocation5 + $0x14] ss:$8 sps:$4 sm:$0xff]   ;;  %v1577_v26 = vld [vmem:[#allocation5 + $0x10] ss:$8 sps:$4 sm:$0xff]  }
  0x2e   :  { %v1575_v25 = vld [vmem:[#allocation5 + $0x114] ss:$8 sps:$4 sm:$0xff]   ;;  %v1578_v27 = vld [vmem:[#allocation5 + $0x110] ss:$8 sps:$4 sm:$0xff]   ;;  %v1579_v28 = vld [vmem:[#allocation5 + $0x4] ss:$8 sps:$4 sm:$0xff]  }
  0x2f   :  { %764 = vmatpush1.bf16.msra.mxu0 %v1553_v10  ;;  %v1581_v29 = vld [vmem:[#allocation5 + $0x104] ss:$8 sps:$4 sm:$0xff]   ;;  %v1583_v30 = vld [vmem:[#allocation5] ss:$8 sps:$4 sm:$0xff]   ;;  %v1585_v32 = vld [vmem:[#allocation5 + $0xf4] ss:$8 sps:$4 sm:$0xff]  }
  0x30   :  { %805 = vmatpush1.bf16.msra.mxu1 %v1554_v11  ;;  %765 = vmatprep.subr.bf16.mxu0 %v1555_v12  ;;  %v1584_v31 = vld [vmem:[#allocation5 + $0x100] ss:$8 sps:$4 sm:$0xff]   ;;  %v1587_v33 = vld [vmem:[#allocation5 + $0x1f4] ss:$8 sps:$4 sm:$0xff]   ;;  %v1589_v34 = vld [vmem:[#allocation5 + $0xf0] ss:$8 sps:$4 sm:$0xff]  }
  0x31   :  { %806 = vmatprep.subr.bf16.mxu1 %v1557_v13  ;;  %v1590_v35 = vld [vmem:[#allocation5 + $0x1f0] ss:$8 sps:$4 sm:$0xff]   ;;  %v1591_v36 = vld [vmem:[#allocation5 + $0xe4] ss:$8 sps:$4 sm:$0xff]   ;;  %v1595_v38 = vld [vmem:[#allocation5 + $0xe0] ss:$8 sps:$4 sm:$0xff]  }
  0x32   :  { %v1593_v37 = vld [vmem:[#allocation5 + $0x1e4] ss:$8 sps:$4 sm:$0xff]   ;;  %v1596_v39 = vld [vmem:[#allocation5 + $0x1e0] ss:$8 sps:$4 sm:$0xff]   ;;  %v1597_v40 = vld [vmem:[#allocation5 + $0xd4] ss:$8 sps:$4 sm:$0xff]  }
  0x33   :  { %766 = vmatpush1.bf16.msra.mxu0 %v1559_v14  ;;  %v1599_v41 = vld [vmem:[#allocation5 + $0x1d4] ss:$8 sps:$4 sm:$0xff]   ;;  %v1601_v42 = vld [vmem:[#allocation5 + $0xd0] ss:$8 sps:$4 sm:$0xff]   ;;  %v1603_v44 = vld [vmem:[#allocation5 + $0xc4] ss:$8 sps:$4 sm:$0xff]  }
  0x34   :  { %807 = vmatpush1.bf16.msra.mxu1 %v1560_v15  ;;  %767 = vmatprep.subr.bf16.mxu0 %v1561_v16  ;;  %v1602_v43 = vld [vmem:[#allocation5 + $0x1d0] ss:$8 sps:$4 sm:$0xff]   ;;  %v1605_v45 = vld [vmem:[#allocation5 + $0x1c4] ss:$8 sps:$4 sm:$0xff]   ;;  %v1607_v49 = vld [vmem:[#allocation5 + $0xc0] ss:$8 sps:$4 sm:$0xff]  }
  0x35   :  { %808 = vmatprep.subr.bf16.mxu1 %v1563_v17  ;;  %v58_v46 = vld [vmem:[#allocation2] sm:$0xff]  ;;  %v59_v48 = vld [vmem:[#allocation2 + $0x8] sm:$0xff]  ;;  %v1609_v52 = vld [vmem:[#allocation5 + $0xb4] ss:$8 sps:$4 sm:$0xff]   ;;  %v1863_v16 = vmov 0   ;;  %vm1865_vm0 = vmmov 0  }
  0x36   :  { %v1315_v47 = vcombine.high %v58_v46, %v58_v46  ;;  %v1608_v50 = vld [vmem:[#allocation5 + $0x1c0] ss:$8 sps:$4 sm:$0xff]   ;;  %v1317_v51 = vcombine.high %v59_v48, %v59_v48  ;;  %v1611_v53 = vld [vmem:[#allocation5 + $0x1b4] ss:$8 sps:$4 sm:$0xff]   ;;  %v1613_v54 = vld [vmem:[#allocation5 + $0xb0] ss:$8 sps:$4 sm:$0xff]   ;;  %v1314_v6 = vcombine.low %v58_v46, %v58_v46  ;;  %v1316_v7 = vcombine.low %v59_v48, %v59_v48 }
  0x37   :  { %768 = vmatpush1.bf16.msra.mxu0 %v1565_v18  ;;  %v1614_v55 = vld [vmem:[#allocation5 + $0x1b0] ss:$8 sps:$4 sm:$0xff]   ;;  %v1615_v56 = vld [vmem:[#allocation5 + $0xa4] ss:$8 sps:$4 sm:$0xff]   ;;  %v1619_v58 = vld [vmem:[#allocation5 + $0xa0] ss:$8 sps:$4 sm:$0xff]  }
  0x38   :  { %809 = vmatpush1.bf16.msra.mxu1 %v1566_v19  ;;  %769 = vmatprep.subr.bf16.mxu0 %v1567_v20  ;;  %v1617_v57 = vld [vmem:[#allocation5 + $0x1a4] ss:$8 sps:$4 sm:$0xff]   ;;  %v1620_v59 = vld [vmem:[#allocation5 + $0x1a0] ss:$8 sps:$4 sm:$0xff]   ;;  %v1621_v60 = vld [vmem:[#allocation5 + $0x94] ss:$8 sps:$4 sm:$0xff]  }
  0x39   :  { %810 = vmatprep.subr.bf16.mxu1 %v1569_v21  ;;  %791 = vmatprep.mubr.bf16.mxu0 %v1315_v47  ;;  %v1623_v61 = vld [vmem:[#allocation5 + $0x194] ss:$8 sps:$4 sm:$0xff]   ;;  %v1625_v62 = vld [vmem:[#allocation5 + $0x90] ss:$8 sps:$4 sm:$0xff]   ;;  %v1627_v0 = vld [vmem:[#allocation5 + $0x84] ss:$8 sps:$4 sm:$0xff]  }
  0x3a   :  { %832 = vmatprep.mubr.bf16.mxu1 %v1317_v51  ;;  %v1626_v63 = vld [vmem:[#allocation5 + $0x190] ss:$8 sps:$4 sm:$0xff]   ;;  %v1629_v1 = vld [vmem:[#allocation5 + $0x184] ss:$8 sps:$4 sm:$0xff]   ;;  %v1631_v2 = vld [vmem:[#allocation5 + $0x80] ss:$8 sps:$4 sm:$0xff]  }
  0x3b   :  { %770 = vmatpush1.bf16.msra.mxu0 %v1571_v22  ;;  %v1632_v3 = vld [vmem:[#allocation5 + $0x180] ss:$8 sps:$4 sm:$0xff]   ;;  %v1639_v4 = vld [vmem:[#allocation5 + $0x274] ss:$8 sps:$4 sm:$0xff]   ;;  %v1637_v8 = vld [vmem:[#allocation5 + $0x270] ss:$8 sps:$4 sm:$0xff]  }
  0x3c   :  { %811 = vmatpush1.bf16.msra.mxu1 %v1572_v23  ;;  %771 = vmatprep.subr.bf16.mxu0 %v1573_v24  ;;  %v1663_v5 = vld [vmem:[#allocation5 + $0x374] ss:$8 sps:$4 sm:$0xff]   ;;  %v1661_v9 = vld [vmem:[#allocation5 + $0x370] ss:$8 sps:$4 sm:$0xff]   ;;  %v1642_v10 = vld [vmem:[#allocation5 + $0x264] ss:$8 sps:$4 sm:$0xff]  }
  0x3d   :  { %812 = vmatprep.subr.bf16.mxu1 %v1575_v25  ;;  %v1669_v11 = vld [vmem:[#allocation5 + $0x364] ss:$8 sps:$4 sm:$0xff]   ;;  %v1640_v12 = vld [vmem:[#allocation5 + $0x260] ss:$8 sps:$4 sm:$0xff]   ;;  %v1645_v14 = vld [vmem:[#allocation5 + $0x254] ss:$8 sps:$4 sm:$0xff]  }
  0x3e   :  { %v1667_v13 = vld [vmem:[#allocation5 + $0x360] ss:$8 sps:$4 sm:$0xff]   ;;  %v1675_v15 = vld [vmem:[#allocation5 + $0x354] ss:$8 sps:$4 sm:$0xff]   ;;  %v1643_v17 = vld [vmem:[#allocation5 + $0x250] ss:$8 sps:$4 sm:$0xff]  }
  0x3f   :  { %772 = vmatpush1.bf16.msra.mxu0 %v1577_v26  ;;  %v1673_v18 = vld [vmem:[#allocation5 + $0x350] ss:$8 sps:$4 sm:$0xff]   ;;  %v1648_v19 = vld [vmem:[#allocation5 + $0x244] ss:$8 sps:$4 sm:$0xff]   ;;  %v1646_v21 = vld [vmem:[#allocation5 + $0x240] ss:$8 sps:$4 sm:$0xff]  }
  0x40   :  { %813 = vmatpush1.bf16.msra.mxu1 %v1578_v27  ;;  %773 = vmatprep.subr.bf16.mxu0 %v1579_v28  ;;  %v1681_v20 = vld [vmem:[#allocation5 + $0x344] ss:$8 sps:$4 sm:$0xff]   ;;  %v1651_v22 = vld [vmem:[#allocation5 + $0x234] ss:$8 sps:$4 sm:$0xff]   ;;  %v1679_v23 = vld [vmem:[#allocation5 + $0x340] ss:$8 sps:$4 sm:$0xff]  }
  0x41   :  { %814 = vmatprep.subr.bf16.mxu1 %v1581_v29  ;;  %v1687_v24 = vld [vmem:[#allocation5 + $0x334] ss:$8 sps:$4 sm:$0xff]   ;;  %v1649_v27 = vld [vmem:[#allocation5 + $0x230] ss:$8 sps:$4 sm:$0xff]   ;;  %v1654_v29 = vld [vmem:[#allocation5 + $0x224] ss:$8 sps:$4 sm:$0xff]  }
  0x42   :  { %v1904_v25 = vld [vmem:[#allocation2 + $0x10] sm:$0xff]  ;;  %v1684_v48 = vld [vmem:[#allocation5 + $0x2c4] ss:$8 sps:$4 sm:$0xff]   ;;  %vm940_vm2 = vcmask 7168   ;;  %s1866_s7 = smov 1.0   ;;  %s1869_s24 = smov [#allocation8]  }
  0x43   :  { %774 = vmatpush1.bf16.msra.mxu0 %v1583_v30  ;;  %v1319_v26 = vcombine.high %v1904_v25, %v1904_v25  ;;  %v1685_v28 = vld [vmem:[#allocation5 + $0x330] ss:$8 sps:$4 sm:$0xff]   ;;  %v1693_v30 = vld [vmem:[#allocation5 + $0x324] ss:$8 sps:$4 sm:$0xff]   ;;  %v1678_v46 = vld [vmem:[#allocation5 + $0x2d4] ss:$8 sps:$4 sm:$0xff]  }
  0x44   :  { %815 = vmatpush1.bf16.msra.mxu1 %v1584_v31  ;;  %775 = vmatprep.subr.bf16.mxu0 %v1585_v32  ;;  %v1652_v31 = vld [vmem:[#allocation5 + $0x220] ss:$8 sps:$4 sm:$0xff]   ;;  %v1676_v47 = vld [vmem:[#allocation5 + $0x2d0] ss:$8 sps:$4 sm:$0xff]   ;;  %s1867_s11 = smov 0.001  }
  0x45   :  { %816 = vmatprep.subr.bf16.mxu1 %v1587_v33  ;;  %v1691_v32 = vld [vmem:[#allocation5 + $0x320] ss:$8 sps:$4 sm:$0xff]   ;;  %v1657_v33 = vld [vmem:[#allocation5 + $0x214] ss:$8 sps:$4 sm:$0xff]   ;;  %v1688_v51 = vld [vmem:[#allocation5 + $0x2b0] ss:$8 sps:$4 sm:$0xff]  }
  0x46   :  { %s1868_s13 = smov 0.01   ;;  %s1304_s25 = sshll.u32 %s1869_s24, 4  ;;  %s1305_s25 = int_to_ptr.vmem [resolvable:$true] %s1304_s25 }
  0x47   :  { %776 = vmatpush2.bf16.msra.mxu0 %v1589_v34  ;;  %v1699_v34 = vld [vmem:[#allocation5 + $0x314] ss:$8 sps:$4 sm:$0xff]   ;;  %s1832_s26 = scalar_lea.vmem %s1305_s25, 128  ;;  %p1837_p3 = scmp.lt.s32.totalorder %s1305_s25, %s1305_s25 }
  0x48   :  { %817 = vmatpush2.bf16.msra.mxu1 %v1590_v35  ;;  %777 = vmatprep.subr.bf16.mxu0 %v1591_v36  ;;  %v1655_v35 = vld [vmem:[#allocation5 + $0x210] ss:$8 sps:$4 sm:$0xff]   ;;  %p1833_p2 = scmp.ne.s32.totalorder %s1305_s25, %s1832_s26  ;;  %p1838_p4 = scmp.lt.s32.totalorder %s1832_s26, %s1832_s26 }
  0x49   :  { %818 = vmatprep.subr.bf16.mxu1 %v1593_v37  ;;  %v1697_v36 = vld [vmem:[#allocation5 + $0x310] ss:$8 sps:$4 sm:$0xff]   ;;  %v1660_v37 = vld [vmem:[#allocation5 + $0x204] ss:$8 sps:$4 sm:$0xff]  }
  0x4a   :  { %p1839_p5 = por %p1838_p4, %p1837_p3 }
  0x4b   :  { %778 = vmatpush2.bf16.msra.mxu0 %v1595_v38  ;;  %v1705_v38 = vld [vmem:[#allocation5 + $0x304] ss:$8 sps:$4 sm:$0xff]  }
  0x4c   :  { %819 = vmatpush2.bf16.msra.mxu1 %v1596_v39  ;;  %779 = vmatprep.subr.bf16.mxu0 %v1597_v40  ;;  %v1658_v39 = vld [vmem:[#allocation5 + $0x200] ss:$8 sps:$4 sm:$0xff]   ;;  %p1840_p6 = pnand %p1839_p5, %p1833_p2 }
  0x4d   :  { %820 = vmatprep.subr.bf16.mxu1 %v1599_v41  ;;  %v1703_v40 = vld [vmem:[#allocation5 + $0x300] ss:$8 sps:$4 sm:$0xff]   ;;  %v1666_v41 = vld [vmem:[#allocation5 + $0x2f4] ss:$8 sps:$4 sm:$0xff]  }
  0x4f   :  { %780 = vmatpush2.bf16.msra.mxu0 %v1601_v42  ;;  %v1709_v42 = vld [vmem:[#allocation2 + $0x18] ss:$0 sps:$4 sm:$0xff]  }
  0x50   :  { %821 = vmatpush2.bf16.msra.mxu1 %v1602_v43  ;;  %781 = vmatprep.subr.bf16.mxu0 %v1603_v44  ;;  %v1664_v43 = vld [vmem:[#allocation5 + $0x2f0] ss:$8 sps:$4 sm:$0xff]   ;;  %v1672_v44 = vld [vmem:[#allocation5 + $0x2e4] ss:$8 sps:$4 sm:$0xff]  }
  0x51   :  { %822 = vmatprep.subr.bf16.mxu1 %v1605_v45  ;;  %v1670_v45 = vld [vmem:[#allocation5 + $0x2e0] ss:$8 sps:$4 sm:$0xff]  }
  0x53   :  { %782 = vmatpush2.bf16.msra.mxu0 %v1607_v49  ;;  %v1682_v49 = vld [vmem:[#allocation5 + $0x2c0] ss:$8 sps:$4 sm:$0xff]  }
  0x54   :  { %823 = vmatpush2.bf16.msra.mxu1 %v1608_v50  ;;  %783 = vmatprep.subr.bf16.mxu0 %v1609_v52  ;;  %v1690_v50 = vld [vmem:[#allocation5 + $0x2b4] ss:$8 sps:$4 sm:$0xff]   ;;  %v1696_v52 = vld [vmem:[#allocation5 + $0x2a4] ss:$8 sps:$4 sm:$0xff]  }
  0x55   :  { %824 = vmatprep.subr.bf16.mxu1 %v1611_v53  ;;  %v1694_v53 = vld [vmem:[#allocation5 + $0x2a0] ss:$8 sps:$4 sm:$0xff]  }
  0x57   :  { %784 = vmatpush2.bf16.msra.mxu0 %v1613_v54  ;;  %v1702_v54 = vld [vmem:[#allocation5 + $0x294] ss:$8 sps:$4 sm:$0xff]  }
  0x58   :  { %825 = vmatpush2.bf16.msra.mxu1 %v1614_v55  ;;  %785 = vmatprep.subr.bf16.mxu0 %v1615_v56  ;;  %v1700_v55 = vld [vmem:[#allocation5 + $0x290] ss:$8 sps:$4 sm:$0xff]   ;;  %v1708_v56 = vld [vmem:[#allocation5 + $0x284] ss:$8 sps:$4 sm:$0xff]  }
  0x59   :  { %826 = vmatprep.subr.bf16.mxu1 %v1617_v57  ;;  %v1706_v57 = vld [vmem:[#allocation5 + $0x280] ss:$8 sps:$4 sm:$0xff]  }
  0x5b   :  { %786 = vmatpush2.bf16.msra.mxu0 %v1619_v58  ;;  %v1318_v58 = vcombine.low %v1904_v25, %v1904_v25 }
  0x5c   :  { %827 = vmatpush2.bf16.msra.mxu1 %v1620_v59  ;;  %787 = vmatprep.subr.bf16.mxu0 %v1621_v60  ;;  %v1712_v59 = vld [vmem:[#allocation7 + $0x70] ss:$8 sps:$4 sm:$0xff]   ;;  %v1864_v60 = vmov 0.0  }
  0x5d   :  { %828 = vmatprep.subr.bf16.mxu1 %v1623_v61  ;;  %v1714_v61 = vld [vmem:[#allocation7 + $0x60] ss:$8 sps:$4 sm:$0xff]  }
  0x5f   :  { %788 = vmatpush2.bf16.msra.mxu0 %v1625_v62  ;;  %v1716_v62 = vld [vmem:[#allocation7 + $0x50] ss:$8 sps:$4 sm:$0xff]  }
  0x60   :  { %829 = vmatpush2.bf16.msra.mxu1 %v1626_v63  ;;  %789 = vmatprep.subr.bf16.mxu0 %v1627_v0  ;;  %v1718_v63 = vld [vmem:[#allocation7 + $0x40] ss:$8 sps:$4 sm:$0xff]   ;;  %v1720_v0 = vld [vmem:[#allocation7 + $0x30] ss:$8 sps:$4 sm:$0xff]  }
  0x61   :  { %830 = vmatprep.subr.bf16.mxu1 %v1629_v1  ;;  %v1722_v1 = vld [vmem:[#allocation7 + $0x20] ss:$8 sps:$4 sm:$0xff]  }
  0x63   :  { %790 = vmatpush2.bf16.msra.mxu0 %v1631_v2  ;;  %v1724_v2 = vld [vmem:[#allocation7 + $0x10] ss:$8 sps:$4 sm:$0xff]  }
  0x64   :  { %831 = vmatpush2.bf16.msra.mxu1 %v1632_v3  ;;  %841 = vmatprep.subr.bf16.mxu0 %v1639_v4  ;;  %v1726_v3 = vld [vmem:[#allocation7] ss:$8 sps:$4 sm:$0xff]  }
  0x65   :  { %882 = vmatprep.subr.bf16.mxu1 %v1663_v5 }
  0x66   :  { %792 = vmatmul.mubr.bf16.vlgmr.msra.gmra.mxu0 %v1314_v6 }
  0x67   :  { %833 = vmatmul.mubr.bf16.vlgmr.msra.gmra.mxu1 %v1316_v7  ;;  %842 = vmatpush1.bf16.msra.mxu0 %v1637_v8 }
  0x68   :  { %883 = vmatpush1.bf16.msra.mxu1 %v1661_v9  ;;  %843 = vmatprep.subr.bf16.mxu0 %v1642_v10 }
  0x69   :  { %884 = vmatprep.subr.bf16.mxu1 %v1669_v11  ;;  %914 = vmatprep.mubr.bf16.mxu1 %v1863_v16 }
  0x6a   :  { %873 = vmatprep.mubr.bf16.mxu0 %v1319_v26 }
  0x6b   :  { %844 = vmatpush1.bf16.msra.mxu0 %v1640_v12 }
  0x6c   :  { %885 = vmatpush1.bf16.msra.mxu1 %v1667_v13  ;;  %845 = vmatprep.subr.bf16.mxu0 %v1645_v14 }
  0x6d   :  { %886 = vmatprep.subr.bf16.mxu1 %v1675_v15 }
  0x6f   :  { %846 = vmatpush1.bf16.msra.mxu0 %v1643_v17 }
  0x70   :  { %887 = vmatpush1.bf16.msra.mxu1 %v1673_v18  ;;  %847 = vmatprep.subr.bf16.mxu0 %v1648_v19 }
  0x71   :  { %888 = vmatprep.subr.bf16.mxu1 %v1681_v20 }
  0x73   :  { %848 = vmatpush1.bf16.msra.mxu0 %v1646_v21 }
  0x74   :  { %889 = vmatpush1.bf16.msra.mxu1 %v1679_v23  ;;  %849 = vmatprep.subr.bf16.mxu0 %v1651_v22 }
  0x75   :  { %890 = vmatprep.subr.bf16.mxu1 %v1687_v24 }
  0x77   :  { %850 = vmatpush1.bf16.msra.mxu0 %v1649_v27 }
  0x78   :  { %891 = vmatpush1.bf16.msra.mxu1 %v1685_v28  ;;  %851 = vmatprep.subr.bf16.mxu0 %v1654_v29 }
  0x79   :  { %892 = vmatprep.subr.bf16.mxu1 %v1693_v30 }
  0x7b   :  { %852 = vmatpush1.bf16.msra.mxu0 %v1652_v31 }
  0x7c   :  { %893 = vmatpush1.bf16.msra.mxu1 %v1691_v32  ;;  %853 = vmatprep.subr.bf16.mxu0 %v1657_v33  ;;  %v931_v32 = vlaneseq }
  0x7d   :  { %894 = vmatprep.subr.bf16.mxu1 %v1699_v34 }
  0x7e   :  { %v932_v33 = vshrl.u32 %v931_v32, 7 }
  0x7f   :  { %854 = vmatpush1.bf16.msra.mxu0 %v1655_v35 }
  0x80   :  { %895 = vmatpush1.bf16.msra.mxu1 %v1697_v36  ;;  %855 = vmatprep.subr.bf16.mxu0 %v1660_v37  ;;  %vm936_vm1 = vcmp.lt.s32.totalorder %v932_v33, 2 }
  0x81   :  { %896 = vmatprep.subr.bf16.mxu1 %v1705_v38  ;;  %v1434_v36 = vsel %vm936_vm1, 1.0, %v1864_v60 }
  0x83   :  { %856 = vmatpush1.bf16.msra.mxu0 %v1658_v39 }
  0x84   :  { %897 = vmatpush1.bf16.msra.mxu1 %v1703_v40  ;;  %857 = vmatprep.subr.bf16.mxu0 %v1666_v41  ;;  %v951_v40 = vsel %vm940_vm2, %v1434_v36, 0.0 }
  0x85   :  { %1473 = vmatprep.subr.bf16.mxu1 %v1864_v60 }
  0x87   :  { %915 = vmatmul.mubr.bf16.vlgmr.msra.gmra.mxu1 %v1709_v42  ;;  %858 = vmatpush2.bf16.msra.mxu0 %v1664_v43 }
  0x88   :  { %859 = vmatprep.subr.bf16.mxu0 %v1672_v44  ;;  %1474 = vmatpush3.bf16.msra.mxu1 %v1712_v59 }
  0x89   :  { %1475 = vmatprep.subr.bf16.mxu1 %v1864_v60  ;;  %1489 = vmatprep.mubr.msk.bf16.mxu1 %vm1865_vm0, %v1864_v60 }
  0x8b   :  { %860 = vmatpush2.bf16.msra.mxu0 %v1670_v45 }
  0x8c   :  { %861 = vmatprep.subr.bf16.mxu0 %v1678_v46  ;;  %1476 = vmatpush3.bf16.msra.mxu1 %v1714_v61 }
  0x8d   :  { %1477 = vmatprep.subr.bf16.mxu1 %v1864_v60 }
  0x8f   :  { %862 = vmatpush2.bf16.msra.mxu0 %v1676_v47 }
  0x90   :  { %863 = vmatprep.subr.bf16.mxu0 %v1684_v48  ;;  %1478 = vmatpush3.bf16.msra.mxu1 %v1716_v62 }
  0x91   :  { %1479 = vmatprep.subr.bf16.mxu1 %v1864_v60 }
  0x93   :  { %864 = vmatpush2.bf16.msra.mxu0 %v1682_v49 }
  0x94   :  { %865 = vmatprep.subr.bf16.mxu0 %v1690_v50  ;;  %1480 = vmatpush3.bf16.msra.mxu1 %v1718_v63 }
  0x95   :  { %1481 = vmatprep.subr.bf16.mxu1 %v1864_v60 }
  0x97   :  { %866 = vmatpush2.bf16.msra.mxu0 %v1688_v51 }
  0x98   :  { %867 = vmatprep.subr.bf16.mxu0 %v1696_v52  ;;  %1482 = vmatpush3.bf16.msra.mxu1 %v1720_v0 }
  0x99   :  { %1483 = vmatprep.subr.bf16.mxu1 %v1864_v60 }
  0x9b   :  { %868 = vmatpush2.bf16.msra.mxu0 %v1694_v53 }
  0x9c   :  { %869 = vmatprep.subr.bf16.mxu0 %v1702_v54  ;;  %1484 = vmatpush3.bf16.msra.mxu1 %v1722_v1 }
  0x9d   :  { %1485 = vmatprep.subr.bf16.mxu1 %v1864_v60 }
  0x9f   :  { %870 = vmatpush2.bf16.msra.mxu0 %v1700_v55  ;;  %v1435_v55 = vld [vmem:[%s1986_s3] ss:$0 sm:$0xff] }
  0xa0   :  { %871 = vmatprep.subr.bf16.mxu0 %v1708_v56  ;;  %1486 = vmatpush3.bf16.msra.mxu1 %v1724_v2 }
  0xa1   :  { %1487 = vmatprep.subr.bf16.mxu1 %v1864_v60 }
  0xa3   :  { %872 = vmatpush2.bf16.msra.mxu0 %v1706_v57 }
  0xa4   :  { %1493 = vmatprep.subr.bf16.mxu0 %v1864_v60  ;;  %1488 = vmatpush3.bf16.msra.mxu1 %v1726_v3 }
  0xa6   :  { %874 = vmatmul.mubr.bf16.vlgmr.msra.gmra.mxu0 %v1318_v58 }
  0xa7   :  { %1509 = vmatprep.mubr.msk.bf16.mxu0 %vm1865_vm0, %v1864_v60 }
 0x126   :  { %v793_v4 = vpop.f32.mrf.mxu0 }
 0x127   :  { %v834_v5 = vpop.f32.mrf.mxu1 }
 0x128   :  { %v795_v6 = vpop.f32.mrf.mxu0  ;;  %v835_v16 = vadd.f32 %v834_v5, %v793_v4 }
 0x129   :  { %v836_v7 = vpop.f32.mrf.mxu1 }
 0x12a   :  { %v797_v8 = vpop.f32.mrf.mxu0  ;;  %v837_v18 = vadd.f32 %v836_v7, %v795_v6 }
 0x12b   :  { %v838_v9 = vpop.f32.mrf.mxu1 }
 0x12c   :  { %v798_v10 = vpop.f32.mrf.mxu0 }
 0x12d   :  { %v839_v11 = vpop.f32.mrf.mxu1 }
 0x147   :  { %v916_v12 = vpop.f32.mrf.mxu1 }
 0x149   :  { %v918_v13 = vpop.f32.mrf.mxu1 }
 0x14b   :  { %v920_v14 = vpop.f32.mrf.mxu1 }
 0x14d   :  { %v921_v15 = vpop.f32.mrf.mxu1 }
 0x166   :  { %v875_v17 = vpop.f32.mrf.mxu0 }
 0x167   :  { %v876_v19 = vadd.f32 %v875_v17, %v835_v16 }
 0x168   :  { %v877_v20 = vpop.f32.mrf.mxu0 }
 0x169   :  { %v917_v21 = vadd.f32 %v916_v12, %v876_v19  ;;  %v878_v22 = vadd.f32 %v877_v20, %v837_v18 }
 0x16a   :  { %v879_v23 = vpop.f32.mrf.mxu0 }
 0x16b   :  { %1736 = vtanh.f32 %v917_v21  ;;  %v919_v24 = vadd.f32 %v918_v13, %v878_v22 }
 0x16c   :  { %v880_v25 = vpop.f32.mrf.mxu0 }
 0x16d   :  { %v1433_v26 = vmul.f32 -1.442695, %v919_v24 }
 0x16f   :  { %1738 = vpow2.f32 %v1433_v26 }
 0x178   :  { %v1921_v27 = vpop.eup %1736 }
 0x179   :  { %v1087_v28 = vmul.f32 %v1921_v27, %v1921_v27  ;;  %v985_v29 = vpack.c.bf16 %v1921_v27, %v1921_v27 }
 0x17b   :  { %1088 = vadd.xlane.f32.xlu1 %v1087_v28  ;;  %1490 = vmatmul.mubr.bf16.vlgmr.msra.gmra.mxu1 %v985_v29 }
 0x17c   :  { %v1739_v30 = vpop.eup %1738 }
 0x17d   :  { %v926_v31 = vadd.f32 1.0, %v1739_v30 }
 0x17f   :  { %1740 = vrcp.f32 %v926_v31 }
 0x18c   :  { %v1741_v34 = vpop.eup %1740 }
 0x18d   :  { %v929_v35 = vmul.f32 0.009, %v1741_v34 }
 0x18f   :  { %v930_v37 = vadd.f32 0.001, %v929_v35 }
 0x191   :  { %v939_v38 = vmul.f32 %v1434_v36, %v930_v37 }
 0x193   :  { %v941_v39 = vsel %vm940_vm2, %v939_v38, 0.0 }
 0x194   :  { %942 = vadd.xlane.f32.xlu0 %v941_v39 }
 0x198   :  { %952 = vadd.xlane.f32.xlu0 %v951_v40 }
 0x204   :  { %v1089_v14 = vpop.xlane.xlu1 %1088 }
 0x205   :  { %v1096_v16 = vmax.f32 %v1089_v14, 1e-15 }
 0x21d   :  { %v943_v41 = vpop.xlane.xlu0 %942 }
 0x21e   :  { %v944_v42 = vrot.slane %v943_v41, 4 }
 0x220   :  { %v945_v43 = vadd.f32 %v944_v42, %v943_v41 }
 0x221   :  { %v953_v44 = vpop.xlane.xlu0 %952 }
 0x222   :  { %v946_v45 = vrot.slane %v945_v43, 2  ;;  %v954_v46 = vrot.slane %v953_v44, 4 }
 0x224   :  { %v955_v47 = vadd.f32 %v954_v46, %v953_v44  ;;  %v947_v48 = vadd.f32 %v946_v45, %v945_v43 }
 0x226   :  { %v956_v49 = vrot.slane %v955_v47, 2  ;;  %v948_v50 = vrot.slane %v947_v48, 1 }
 0x228   :  { %v949_v51 = vadd.f32 %v948_v50, %v947_v48  ;;  %v957_v52 = vadd.f32 %v956_v49, %v955_v47 }
 0x22a   :  { %1513 = vpush %v949_v51  ;;  %v958_v53 = vrot.slane %v957_v52, 1 }
 0x22c   :  { %v959_v54 = vadd.f32 %v958_v53, %v957_v52 }
 0x22e   :  { %1515 = vpush %v959_v54 }
 0x23b   :  { %v1075_v56 = vpop.f32.mrf.mxu1 }
 0x23c   :  { %v1076_v57 = vadd.f32 %v1435_v55, %v1075_v56 }
 0x23d   :  { %v1491_v58 = vpop.f32.mrf.mxu1 }
 0x23e   :  { %v1444_v59 = vmul.f32 -1.442695, %v1076_v57 }
 0x23f   :  { %v1078_v61 = vpop.f32.mrf.mxu1 }
 0x240   :  { %1742 = vpow2.f32 %v1444_v59 }
 0x241   :  { %v1492_v62 = vpop.f32.mrf.mxu1 }
 0x24d   :  { %v1743_v63 = vpop.eup %1742 }
 0x24e   :  { %v1084_v0 = vadd.f32 1.0, %v1743_v63 }
 0x250   :  { %1744 = vrcp.f32 %v1084_v0 }
 0x25b   :  { %s1514_s5 = spop %1513 }
 0x25d   :  { %v1931_v1 = vpop.eup %1744 }
 0x25e   :  { %v1093_v2 = vmul.f32 %v1931_v1, %v1921_v27  ;;  %v1090_v3 = vmul.f32 %v1931_v1, %v1931_v1 }
 0x25f   :  { %s1516_s6 = spop %1515 }
 0x260   :  { %s961_s8 = smax.f32 %s1866_s7, %s1516_s6  ;;  %1094 = vadd.xlane.f32.xlu0 %v1093_v2  ;;  %1091 = vadd.xlane.f32.xlu1 %v1090_v3 }
 0x261   :  { %v962_v4 = vstv %s961_s8 }
 0x262   :  { %1746 = vrcp.f32 %v962_v4 }
 0x26f   :  { %v1747_v5 = vpop.eup %1746 }
 0x270   :  { %1517 = vpush %v1747_v5 }
 0x2a1   :  { %s1518_s9 = spop %1517 }
 0x2a2   :  { %s965_s10 = smul.f32 %s1518_s9, %s1514_s5 }
 0x2a4   :  { %s966_s12 = smax.f32 %s1867_s11, %s965_s10 }
 0x2a5   :  { %s1937_s14 = smin.f32 %s1868_s13, %s966_s12 }
 0x2a6   :  { %v1940_v6 = vstv %s1937_s14  ;;  %s1140_s18 = smul.f32 %s1937_s14, %s1937_s14 }
 0x2a7   :  { %1748 = vrsqrt.f32 %v1940_v6  ;;  %vm1100_vm3 = vcmp.eq.f32.partialorder %v1940_v6, inf  ;;  %v1103_v9 = vand.u32 2147483648, %v1940_v6  ;;  %vm1102_vm4 = vcmp.eq.f32.partialorder %v1940_v6, 0.0  ;;  %s1128_s19 = smul.f32 2.0, %s1937_s14 }
 0x2a8   :  { %v1141_v32 = vstv %s1140_s18 }
 0x2a9   :  { %v1129_v35 = vstv %s1128_s19 }
 0x2b4   :  { %v1749_v7 = vpop.eup %1748 }
 0x2b5   :  { %v1099_v8 = vmul.f32 %v1749_v7, %v1940_v6 }
 0x2b7   :  { %v1101_v10 = vsel %vm1100_vm3, %v1940_v6, %v1099_v8 }
 0x2b8   :  { %v1104_v11 = vsel %vm1102_vm4, %v1103_v9, %v1101_v10 }
 0x2b9   :  { %1519 = vpush %v1104_v11 }
 0x2e9   :  { %v1092_v15 = vpop.xlane.xlu1 %1091  ;;  %v1095_v25 = vpop.xlane.xlu0 %1094 }
 0x2ea   :  { %s1948_s15 = spop %1519  ;;  %v1114_v17 = vmax.f32 %v1092_v15, 1e-15 }
 0x2eb   :  { %v1106_v12 = vstv %s1948_s15 }
 0x2ec   :  { %1750 = vrcp.f32 %v1106_v12 }
 0x2ed   :  { %1752 = vrsqrt.f32 %v1096_v16 }
 0x2ee   :  { %1754 = vrsqrt.f32 %v1114_v17 }
 0x2f9   :  { %v1751_v13 = vpop.eup %1750 }
 0x2fa   :  { %1521 = vpush %v1751_v13  ;;  %v1753_v18 = vpop.eup %1752 }
 0x2fb   :  { %v1755_v19 = vpop.eup %1754 }
 0x32b   :  { %s1522_s16 = spop %1521 }
 0x32c   :  { %s1109_s17 = smul.f32 0.99999, %s1522_s16 }
 0x32e   :  { %v1953_v20 = vstv %s1109_s17 }
 0x32f   :  { %v1112_v21 = vmul.f32 %v1753_v18, %v1953_v20  ;;  %v1116_v22 = vmul.f32 %v1755_v19, %v1953_v20 }
 0x331   :  { %v1113_v23 = vmin.f32 %v1112_v21, 1.0  ;;  %v1117_v24 = vmin.f32 %v1116_v22, 1.0 }
 0x333   :  { %v1119_v26 = vmul.f32 %v1113_v23, %v1089_v14  ;;  %v1124_v28 = vmul.f32 %v1113_v23, %v1095_v25  ;;  %v1122_v30 = vmul.f32 %v1117_v24, %v1092_v15  ;;  %v1118_v43 = vmul.f32 %v1921_v27, %v1113_v23 }
 0x334   :  { %v1121_v48 = vmul.f32 %v1931_v1, %v1117_v24 }
 0x335   :  { %v1120_v29 = vmul.f32 %v1119_v26, %v1113_v23  ;;  %v1125_v31 = vmul.f32 %v1124_v28, %v1117_v24  ;;  %v1123_v36 = vmul.f32 %v1122_v30, %v1117_v24  ;;  %v1126_v46 = vsub.f32 0.0, %v1118_v43 }
 0x337   :  { %v1127_v33 = vsub.f32 0.0, %v1125_v31  ;;  %v1142_v34 = vmul.f32 %v1141_v32, %v1120_v29  ;;  %v1133_v42 = vmul.f32 %v1123_v36, %v1940_v6  ;;  %v1136_v44 = vmul.f32 %v1120_v29, %v1940_v6 }
 0x339   :  { %v1130_v37 = vmul.f32 %v1129_v35, %v1127_v33  ;;  %v1143_v38 = vmul.f32 %v1142_v34, %v1123_v36  ;;  %v1137_v47 = vsub.f32 1.0, %v1136_v44  ;;  %v1733_v44 = vld [vmem:[#allocation7 + $0x24] ss:$8 sps:$4 sm:$0xff]  }
 0x33b   :  { %v1131_v39 = vadd.f32 1.0, %v1130_v37  ;;  %v1138_v50 = vmul.f32 %v1137_v47, %v1121_v48 }
 0x33d   :  { %v1144_v40 = vadd.f32 %v1143_v38, %v1131_v39  ;;  %v1134_v45 = vadd.f32 %v1133_v42, %v1131_v39  ;;  %v1730_v42 = vld [vmem:[#allocation7 + $0x54] ss:$8 sps:$4 sm:$0xff]  }
 0x33f   :  { %v1145_v41 = vadd.f32 1e-15, %v1144_v40  ;;  %v1135_v49 = vmul.f32 %v1134_v45, %v1126_v46  ;;  %v1728_v40 = vld [vmem:[#allocation7 + $0x74] ss:$8 sps:$4 sm:$0xff]   ;;  %v1735_v46 = vld [vmem:[#allocation7 + $0x4] ss:$8 sps:$4 sm:$0xff]  }
 0x340   :  { %1494 = vmatpush3.bf16.msra.mxu0 %v1728_v40  ;;  %v1734_v45 = vld [vmem:[#allocation7 + $0x14] ss:$8 sps:$4 sm:$0xff]  }
 0x341   :  { %1756 = vrcp.f32 %v1145_v41  ;;  %v1139_v51 = vadd.f32 %v1138_v50, %v1135_v49  ;;  %v1729_v41 = vld [vmem:[#allocation7 + $0x64] ss:$8 sps:$4 sm:$0xff]   ;;  %1495 = vmatprep.subr.bf16.mxu0 %v1864_v60 }
 0x344   :  { %1496 = vmatpush3.bf16.msra.mxu0 %v1729_v41 }
 0x345   :  { %1497 = vmatprep.subr.bf16.mxu0 %v1864_v60 }
 0x348   :  { %1498 = vmatpush3.bf16.msra.mxu0 %v1730_v42 }
 0x349   :  { %1499 = vmatprep.subr.bf16.mxu0 %v1864_v60 }
 0x34e   :  { %v1757_v52 = vpop.eup %1756 }
 0x34f   :  { %v1147_v53 = vmul.f32 %v1757_v52, %v1139_v51 }
 0x351   :  { %v1177_v54 = vmul.f32 %v1147_v53, %v1118_v43  ;;  %v1148_v55 = vmul.f32 %v1147_v53, %v1147_v53 }
 0x353   :  { %1178 = vadd.xlane.f32.xlu0 %v1177_v54  ;;  %1149 = vadd.xlane.f32.xlu1 %v1148_v55 }
 0x3dc   :  { %v1150_v56 = vpop.xlane.xlu1 %1149  ;;  %v1179_v15 = vpop.xlane.xlu0 %1178 }
 0x3dd   :  { %v1151_v57 = vmax.f32 %v1150_v56, 1e-15 }
 0x3df   :  { %1758 = vrsqrt.f32 %v1151_v57  ;;  %vm1154_vm5 = vcmp.eq.f32.partialorder %v1151_v57, inf  ;;  %v1157_v61 = vand.u32 2147483648, %v1151_v57  ;;  %vm1156_vm6 = vcmp.eq.f32.partialorder %v1151_v57, 0.0 }
 0x3ec   :  { %v1759_v58 = vpop.eup %1758 }
 0x3ed   :  { %v1153_v59 = vmul.f32 %v1759_v58, %v1151_v57 }
 0x3ef   :  { %v1155_v62 = vsel %vm1154_vm5, %v1151_v57, %v1153_v59 }
 0x3f0   :  { %v1158_v63 = vsel %vm1156_vm6, %v1157_v61, %v1155_v62 }
 0x3f1   :  { %v1160_v0 = vmul.f32 %v1158_v63, %v1106_v12 }
 0x3f3   :  { %v1445_v1 = vclamps-f32 %v1160_v0, 0.9999999 }
 0x3f5   :  { %v1164_v2 = vsub.f32 1.0, %v1445_v1  ;;  %v1163_v3 = vadd.f32 1.0, %v1445_v1 }
 0x3f7   :  { %1760 = vrcp.f32 %v1164_v2 }
 0x404   :  { %v1761_v4 = vpop.eup %1760 }
 0x405   :  { %v1166_v5 = vmul.f32 %v1761_v4, %v1163_v3 }
 0x407   :  { %1762 = vlog2.f32 %v1166_v5 }
 0x408   :  { %1764 = vrcp.f32 %v1160_v0 }
 0x414   :  { %v1763_v7 = vpop.eup %1762 }
 0x415   :  { %v1168_v8 = vmul.f32 0.6931472, %v1763_v7  ;;  %v1765_v11 = vpop.eup %1764 }
 0x417   :  { %v1169_v9 = vmul.f32 0.5, %v1168_v8 }
 0x419   :  { %v1170_v10 = vmul.f32 0.7, %v1169_v9 }
 0x41b   :  { %1766 = vtanh.f32 %v1170_v10 }
 0x428   :  { %v1767_v13 = vpop.eup %1766 }
 0x429   :  { %v1173_v14 = vmul.f32 %v1767_v13, %v1765_v11 }
 0x42b   :  { %v1175_v16 = vmul.f32 %v1173_v14, %v1173_v14  ;;  %v1180_v17 = vmul.f32 %v1179_v15, %v1173_v14  ;;  %v1174_v26 = vmul.f32 %v1173_v14, %v1147_v53 }
 0x42d   :  { %v1176_v12 = vmul.f32 %v1175_v16, %v1150_v56  ;;  %v1181_v18 = vmul.f32 %v1180_v17, %v1129_v35  ;;  %v1186_v29 = vmul.f32 %v1174_v26, %v1137_v47 }
 0x42f   :  { %v1182_v19 = vadd.f32 1.0, %v1181_v18  ;;  %v1188_v21 = vmul.f32 %v1176_v12, %v1142_v34  ;;  %v1183_v24 = vmul.f32 %v1176_v12, %v1940_v6 }
 0x431   :  { %v1189_v22 = vadd.f32 %v1188_v21, %v1182_v19  ;;  %v1184_v25 = vadd.f32 %v1183_v24, %v1182_v19 }
 0x433   :  { %v1190_v23 = vadd.f32 1e-15, %v1189_v22  ;;  %v1185_v28 = vmul.f32 %v1184_v25, %v1118_v43  ;;  %v1731_v43 = vld [vmem:[#allocation7 + $0x44] ss:$8 sps:$4 sm:$0xff]  }
 0x434   :  { %1500 = vmatpush3.bf16.msra.mxu0 %v1731_v43 }
 0x435   :  { %1768 = vrcp.f32 %v1190_v23  ;;  %v1187_v30 = vadd.f32 %v1186_v29, %v1185_v28  ;;  %1501 = vmatprep.subr.bf16.mxu0 %v1864_v60 }
 0x442   :  { %v1769_v31 = vpop.eup %1768 }
 0x443   :  { %v1192_v32 = vmul.f32 %v1769_v31, %v1187_v30 }
 0x445   :  { %v1193_v33 = vmul.f32 %v1192_v32, %v1192_v32 }
 0x447   :  { %1194 = vadd.xlane.f32.xlu1 %v1193_v33 }
 0x4d0   :  { %v1195_v36 = vpop.xlane.xlu1 %1194 }
 0x4d1   :  { %v1196_v37 = vmax.f32 %v1195_v36, 1e-15 }
 0x4d3   :  { %1770 = vrsqrt.f32 %v1196_v37 }
 0x4e0   :  { %v1771_v35 = vpop.eup %1770 }
 0x4e1   :  { %v1198_v34 = vmul.f32 %v1771_v35, %v1953_v20  ;;  %v1732_v20 = vld [vmem:[#allocation7 + $0x34] ss:$8 sps:$4 sm:$0xff]  }
 0x4e2   :  { %1502 = vmatpush3.bf16.msra.mxu0 %v1732_v20 }
 0x4e3   :  { %v1199_v38 = vmin.f32 %v1198_v34, 1.0  ;;  %1503 = vmatprep.subr.bf16.mxu0 %v1864_v60 }
 0x4e5   :  { %v1200_v39 = vmul.f32 %v1199_v38, %v1192_v32 }
 0x4e6   :  { %1504 = vmatpush3.bf16.msra.mxu0 %v1733_v44 }
 0x4e7   :  { %vm1201_vm7 = vcmp.ne.f32.partialorder %v1200_v39, %v1200_v39  ;;  %1505 = vmatprep.subr.bf16.mxu0 %v1864_v60 }
 0x4e8   :  { %v1202_v6 = vsel %vm1201_vm7, 1.0, %v1864_v60 }
 0x4e9   :  { %1203 = vmax.xlane.f32.xlu0 %v1202_v6 }
 0x4ea   :  { %1506 = vmatpush3.bf16.msra.mxu0 %v1734_v45 }
 0x4eb   :  { %1507 = vmatprep.subr.bf16.mxu0 %v1864_v60  ;;  %v1446_v60 = vld [vmem:[%s1986_s3 + $0x1] ss:$0 sm:$0xff] }
 0x4ee   :  { %1508 = vmatpush3.bf16.msra.mxu0 %v1735_v46 }
 0x572   :  { %v1204_v47 = vpop.xlane.xlu0 %1203 }
 0x573   :  { %v1205_v48 = vrot.slane %v1204_v47, 4 }
 0x575   :  { %v1206_v49 = vmax.f32 %v1204_v47, %v1205_v48 }
 0x577   :  { %v1207_v50 = vrot.slane %v1206_v49, 2 }
 0x579   :  { %v1208_v51 = vmax.f32 %v1206_v49, %v1207_v50 }
 0x57b   :  { %v1209_v52 = vrot.slane %v1208_v51, 1 }
 0x57d   :  { %v1210_v53 = vmax.f32 %v1208_v51, %v1209_v52 }
 0x57f   :  { %1523 = vpush %v1210_v53 }
 0x5b0   :  { %s1524_s20 = spop %1523 }
 0x5b1   :  { %p1212_p1 = scmp.gt.f32.partialorder %s1524_s20, 0.0 }
 0x5b3   :  { %s1213_s21 = scalar_select %p1212_p1, 1, 0 }
 0x5b5   :  { %v1214_v54 = vstv %s1213_s21 }
 0x5b6   :  { %vm1215_vm8 = vcmp.eq.s32.totalorder %v1214_v54, 1 }
 0x5b7   :  { %v1216_v55 = vsel %vm1215_vm8, %v1921_v27, %v1200_v39 }
 0x5b8   :  { %v1217_v56 = vpack.c.bf16 %v1216_v55, %v1216_v55 }
 0x5ba   :  { %1510 = vmatmul.mubr.bf16.vlgmr.msra.gmra.mxu0 %v1217_v56 }
 0x67a   :  { %v1291_v57 = vpop.f32.mrf.mxu0 }
 0x67b   :  { %v1292_v58 = vadd.f32 %v1446_v60, %v1291_v57 }
 0x67c   :  { %v1511_v59 = vpop.f32.mrf.mxu0 }
 0x67d   :  { %1297 = vst [vmem:[#allocation8] sm:$0xff] %v1292_v58 }
 0x67e   :  { %v1294_v61 = vpop.f32.mrf.mxu0 }
 0x67f   :  { %1843 = shalt.err (!%p1840_p6)
}
 0x680   :  { %1307 = dma.vmem_to_hbm [thread:$0]  %s1305_s25, 128, %s1987_s4, [#allocation4]   ;;  %v1512_v27 = vpop.f32.mrf.mxu0 }
 0x681   :  { %1856 = dma.done.wait [#allocation4], 128  }
 0x682   :  { %1857 = vsyncadd [#allocation4], 4294967168 }
 0x683   :  { %1311 = vsyncpa [#allocation3], 1 }
 0x684   :  { %1312 = vsyncpa [#allocation6], 1 }
 0x685   :  { %1313 = vsyncpa [#allocation4], 1 }

</bundles_post_ra>
